<compile_context>
chip_gen: v7x
topology: tpu7x:2x2x1
jax: 0.10.0
libtpu: 0.0.40
codegen_flags: <defaults>
</compile_context>

<pallas_src>
import math

import jax
import jax.numpy as jnp
from jax import lax
from jax.experimental import pallas as pl
from jax.experimental.pallas import tpu as pltpu

# ArcFace hyper-parameters (match the module defaults).
S_SCALE = 128.0
MARGIN = 0.1
EPS_CLAMP = 1e-7        # cosine clamp, as in the torch code
EPS_NORM = 1e-12        # F.normalize eps
COS_M = math.cos(MARGIN)
SIN_M = math.sin(MARGIN)

LANE = 128
SUBLANE = 8


# ----------------------------------------------------------------------------
# Helpers
# ----------------------------------------------------------------------------
def _round_up(n, m):
    return (n + m - 1) // m * m


def _pad_axis(a, axis, size):
    pad = size - a.shape[axis]
    if pad == 0:
        return a
    widths = [(0, 0)] * a.ndim
    widths[axis] = (0, pad)
    return jnp.pad(a, widths)


def _pad2d(a, rows, cols):
    return _pad_axis(_pad_axis(a, 0, rows), 1, cols)


def _vmem_limit_bytes():
    """Per-generation scoped-VMEM budget (v5e/v6e -> 64 MiB, v7x -> ~48 MiB)."""
    cap = None
    try:
        cap = getattr(pltpu.get_tpu_info(), "vmem_capacity_bytes", None)
    except Exception:
        cap = None
    if not cap:
        cap = 64 * 1024 * 1024          # conservative: v7x physical per-TC VMEM
    return int(max(32 * 1024 * 1024,
                   min(cap - 16 * 1024 * 1024, 64 * 1024 * 1024)))


def _pick_class_tiling(n_classes, vmem_budget):
    """Class tile width and padded class count.

    Keep the double-buffered f32 output tile (worst case 256 batch rows) under
    ~1/4 of the scoped VMEM budget; keep the tile a multiple of 512 (streaming
    roofline), and pad the class dim to a multiple of the tile (padding is
    inert and sliced off by the wrapper).
    """
    cap = (vmem_budget // 4) // (256 * 4 * 2)
    cap = max(512, min(4096, cap // 512 * 512))
    c512 = _round_up(n_classes, 512)
    if c512 <= cap:
        return c512, c512
    return cap, _round_up(n_classes, cap)


# ----------------------------------------------------------------------------
# Kernel 1: Embedding MLP (fc1->relu->fc2->relu->fc3) + L2 normalize
# ----------------------------------------------------------------------------
def _embed_kernel(x_ref, w1_ref, b1_ref, w2_ref, b2_ref, w3_ref, b3_ref, e_ref):
    cdt = w1_ref.dtype  # MXU input dtype (bf16); accumulation is f32 below.

    h = jnp.dot(x_ref[...], w1_ref[...], preferred_element_type=jnp.float32)
    h = jnp.maximum(h + b1_ref[...], 0.0)
    h = jnp.dot(h.astype(cdt), w2_ref[...], preferred_element_type=jnp.float32)
    h = jnp.maximum(h + b2_ref[...], 0.0)
    e = jnp.dot(h.astype(cdt), w3_ref[...], preferred_element_type=jnp.float32)
    e = e + b3_ref[...]

    # F.normalize(e, p=2, dim=1): x / max(||x||, eps) == x * rsqrt(max(sumsq, eps^2))
    inv = lax.rsqrt(jnp.maximum(jnp.sum(e * e, axis=1, keepdims=True),
                                EPS_NORM * EPS_NORM))
    e_ref[...] = (e * inv).astype(e_ref.dtype)


# ----------------------------------------------------------------------------
# Kernel 2: ArcFace margin head for one (class tile, batch tile) pair.
#   grid = (class tiles, batch tiles); program_id(0) is the class tile.
#   cosine = e_norm @ wn_t  (wn_t pre-normalized + pre-transposed on the host)
# ----------------------------------------------------------------------------
def _arcface_head_kernel(label_ref, e_ref, wt_ref, out_ref):
    tile_c = out_ref.shape[1]

    cosine = jnp.dot(e_ref[...], wt_ref[...], preferred_element_type=jnp.float32)
    cosine = jnp.clip(cosine, -1.0 + EPS_CLAMP, 1.0 - EPS_CLAMP)
    scaled = S_SCALE * cosine

    class_off = pl.program_id(0) * tile_c
    local = label_ref[...] - class_off                       # (tile_b, 1) int32
    any_hit = jnp.any(jnp.logical_and(local >= 0, local < tile_c))

    @pl.when(any_hit)
    def _():
        # cos(acos(c) + m) == c*cos(m) - sqrt(1 - c^2)*sin(m)  (exact identity,
        # sin(acos(c)) >= 0) -> no arccos needed in the kernel.
        target = cosine * COS_M - jnp.sqrt(1.0 - cosine * cosine) * SIN_M
        col = lax.broadcasted_iota(jnp.int32, cosine.shape, 1)
        hit = (col == local).astype(jnp.float32)
        # out = s*cosine + one_hot * s*(target - cosine)
        out_ref[...] = scaled + hit * (S_SCALE * target - scaled)

    @pl.when(jnp.logical_not(any_hit))
    def _():
        out_ref[...] = scaled


# ----------------------------------------------------------------------------
# Host-side parameter prep (done ONCE, outside the per-call path):
#   pad to aligned shapes (embed dim only to 8), pre-normalize + pre-transpose
#   the ArcFace weight, pick the class tiling from the per-gen VMEM budget,
#   cast MXU operands to bf16 (biases stay f32).
# ----------------------------------------------------------------------------
def prepare_params(params, *, weight_dtype=jnp.bfloat16):
    w1, b1 = params["w1"], params["b1"]
    w2, b2 = params["w2"], params["b2"]
    w3, b3 = params["w3"], params["b3"]
    wa = params["wa"]                                   # (C, E), torch layout

    d_in, h1 = w1.shape
    h2 = w2.shape[1]
    e = w3.shape[1]
    c = wa.shape[0]

    d_p = _round_up(d_in, LANE)
    h1_p = _round_up(h1, LANE)
    h2_p = _round_up(h2, LANE)
    e_p = _round_up(e, SUBLANE)        # embed dim only needs sublane alignment
    vmem_bytes = _vmem_limit_bytes()
    tile_c, c_p = _pick_class_tiling(c, vmem_bytes)

    # Row-normalize ArcFace weight once (f32), pad, transpose to (E_p, C_p).
    wa32 = wa.astype(jnp.float32)
    wn = wa32 * lax.rsqrt(jnp.maximum(jnp.sum(wa32 * wa32, axis=1, keepdims=True),
                                      EPS_NORM * EPS_NORM))
    wn_t = _pad2d(wn, c_p, e_p).T                        # (E_p, C_p)

    prepped = {
        "w1": _pad2d(w1, d_p, h1_p).astype(weight_dtype),
        "b1": _pad2d(b1, 1, h1_p).astype(jnp.float32),
        "w2": _pad2d(w2, h1_p, h2_p).astype(weight_dtype),
        "b2": _pad2d(b2, 1, h2_p).astype(jnp.float32),
        "w3": _pad2d(w3, h2_p, e_p).astype(weight_dtype),
        "b3": _pad2d(b3, 1, e_p).astype(jnp.float32),
        "wn_t": wn_t.astype(weight_dtype),
    }
    dims = dict(d_in=d_in, d_p=d_p, h1_p=h1_p, h2_p=h2_p,
                e=e, e_p=e_p, c=c, c_p=c_p, tile_c=tile_c,
                vmem_bytes=vmem_bytes)
    return prepped, dims


# ----------------------------------------------------------------------------
# Forward wrapper: x (B, D_in) f32, label (B,) int -> (B, C) f32 logits.
# ----------------------------------------------------------------------------
def arcface_classifier(x, label, prepped, dims):
    B = x.shape[0]
    assert x.shape[1] == dims["d_in"]
    d_p, e_p = dims["d_p"], dims["e_p"]
    c, c_p = dims["c"], dims["c_p"]
    vmem_bytes = dims["vmem_bytes"]
    wdt = prepped["w1"].dtype

    # Batch tiling (16-row minimum so bf16 blocks use native sublane packing).
    if B >= 512:
        tile_b = 256
    elif B >= 128:
        tile_b = 128
    else:
        tile_b = _round_up(B, 2 * SUBLANE)
    b_p = _round_up(B, tile_b)
    nb = b_p // tile_b

    # Class tiling: pre-picked in prepare_params; if the grid would expose a
    # single step, halve the tile so both v7x TensorCores get work.
    tile_c = dims["tile_c"]
    nc = c_p // tile_c
    if nb * nc < 2 and tile_c % 256 == 0:
        tile_c //= 2
        nc = c_p // tile_c

    x_p = _pad2d(x.astype(jnp.float32), b_p, d_p).astype(wdt)
    lbl = _pad_axis(label.astype(jnp.int32), 0, b_p).reshape(b_p, 1)

    # Whole-array VMEM residency (single buffer) for the constant MLP params —
    # their block index never changes, so double-buffering would only waste VMEM.
    def resident():
        return pl.BlockSpec(memory_space=pltpu.MemorySpace.VMEM)

    # --- Kernel 1: embedding MLP + L2 normalize, batch-tiled ----------------
    e_norm = pl.pallas_call(
        _embed_kernel,
        out_shape=jax.ShapeDtypeStruct((b_p, e_p), wdt),
        grid=(nb,),
        in_specs=[
            pl.BlockSpec((tile_b, d_p), lambda i: (i, 0)),
            resident(), resident(), resident(),
            resident(), resident(), resident(),
        ],
        out_specs=pl.BlockSpec((tile_b, e_p), lambda i: (i, 0)),
        compiler_params=pltpu.CompilerParams(
            dimension_semantics=("parallel",),
            vmem_limit_bytes=vmem_bytes),
    )(x_p, prepped["w1"], prepped["b1"], prepped["w2"], prepped["b2"],
      prepped["w3"], prepped["b3"])

    # --- Kernel 2: ArcFace head. Class axis OUTERMOST so wn_t is streamed
    # from HBM exactly once; tiny e_norm / label blocks re-fetch per step. ----
    logits = pl.pallas_call(
        _arcface_head_kernel,
        out_shape=jax.ShapeDtypeStruct((b_p, c_p), jnp.float32),
        grid=(nc, nb),
        in_specs=[
            pl.BlockSpec((tile_b, 1), lambda jc, ib: (ib, 0)),       # labels
            pl.BlockSpec((tile_b, e_p), lambda jc, ib: (ib, 0)),     # e_norm
            pl.BlockSpec((e_p, tile_c), lambda jc, ib: (0, jc)),     # wn_t tile
        ],
        out_specs=pl.BlockSpec((tile_b, tile_c), lambda jc, ib: (ib, jc)),
        compiler_params=pltpu.CompilerParams(
            dimension_semantics=("parallel", "parallel"),
            vmem_limit_bytes=vmem_bytes),
    )(lbl, e_norm, prepped["wn_t"])

    # Slice off batch / class padding.
    return logits[:B, :c]


# ----------------------------------------------------------------------------
# Init + pure-JAX reference (mirrors the torch forward, incl. the arccos path;
# same bf16 casts on MXU operands so the comparison is apples-to-apples).
# ----------------------------------------------------------------------------
def _xavier(key, fan_in, fan_out, shape):
    limit = jnp.sqrt(6.0 / (fan_in + fan_out))
    return jax.random.uniform(key, shape, jnp.float32, -limit, limit)


def init_params(key, d_in, h1, h2, embed_dim, n_classes):
    ks = jax.random.split(key, 7)
    return {
        # Embedding MLP weights stored (in, out); biases as (1, out) rows.
        "w1": _xavier(ks[0], d_in, h1, (d_in, h1)),
        "b1": _xavier(ks[1], d_in, h1, (1, h1)),
        "w2": _xavier(ks[2], h1, h2, (h1, h2)),
        "b2": _xavier(ks[3], h1, h2, (1, h2)),
        "w3": _xavier(ks[4], h2, embed_dim, (h2, embed_dim)),
        "b3": _xavier(ks[5], h2, embed_dim, (1, embed_dim)),
        # ArcFace weight, PyTorch layout (out_features, in_features) = (C, E).
        "wa": _xavier(ks[6], embed_dim, n_classes, (n_classes, embed_dim)),
    }


def reference(x, label, params, *, weight_dtype=jnp.bfloat16):
    f32 = jnp.float32
    wdt = weight_dtype
    h = jnp.maximum(jnp.dot(x.astype(wdt), params["w1"].astype(wdt),
                            preferred_element_type=f32) + params["b1"], 0.0)
    h = jnp.maximum(jnp.dot(h.astype(wdt), params["w2"].astype(wdt),
                            preferred_element_type=f32) + params["b2"], 0.0)
    e = jnp.dot(h.astype(wdt), params["w3"].astype(wdt),
                preferred_element_type=f32) + params["b3"]
    e = e * lax.rsqrt(jnp.maximum(jnp.sum(e * e, axis=1, keepdims=True),
                                  EPS_NORM * EPS_NORM))
    wa = params["wa"].astype(f32)
    wn = wa * lax.rsqrt(jnp.maximum(jnp.sum(wa * wa, axis=1, keepdims=True),
                                    EPS_NORM * EPS_NORM))
    cosine = jnp.dot(e.astype(wdt), wn.T.astype(wdt), preferred_element_type=f32)
    cosine = jnp.clip(cosine, -1.0 + EPS_CLAMP, 1.0 - EPS_CLAMP)
    target = jnp.cos(jnp.arccos(cosine) + MARGIN)        # torch acos path
    one_hot = jax.nn.one_hot(label, params["wa"].shape[0], dtype=f32)
    return S_SCALE * (one_hot * target + (1.0 - one_hot) * cosine)


if __name__ == "__main__":
    # Small shapes consistent with the module (Embedding ->512->256->3, ArcFace).
    B, D_IN, H1, H2, EMB, C = 8, 128, 512, 256, 3, 10

    key = jax.random.PRNGKey(0)
    kx, kl, kp = jax.random.split(key, 3)
    x = jax.random.normal(kx, (B, D_IN), jnp.float32)
    label = jax.random.randint(kl, (B,), 0, C, jnp.int32)
    params = init_params(kp, D_IN, H1, H2, EMB, C)

    prepped, dims = prepare_params(params)            # one-time host prep
    out = jax.block_until_ready(arcface_classifier(x, label, prepped, dims))

    ref = reference(x, label, params)
    assert out.shape == (B, C)
    err = float(jnp.max(jnp.abs(out - ref)))
    assert jnp.allclose(out, ref, atol=5e-2, rtol=5e-3), f"max abs err {err}"

    print("KERNEL_OK")
</pallas_src>

<mosaic_0001>
module attributes {stable_mosaic.version = 11 : i64} {
  func.func @_embed_kernel(%arg0: i32, %arg1: memref<16x128xbf16, #tpu.memory_space<vmem>>, %arg2: memref<128x512xbf16, #tpu.memory_space<vmem>>, %arg3: memref<1x512xf32, #tpu.memory_space<vmem>>, %arg4: memref<512x256xbf16, #tpu.memory_space<vmem>>, %arg5: memref<1x256xf32, #tpu.memory_space<vmem>>, %arg6: memref<256x8xbf16, #tpu.memory_space<vmem>>, %arg7: memref<1x8xf32, #tpu.memory_space<vmem>>, %arg8: memref<16x8xbf16, #tpu.memory_space<vmem>>) attributes {dimension_semantics = [#tpu.dimension_semantics<parallel>], iteration_bounds = array<i64: 1>, scalar_prefetch = 0 : i64, scratch_operands = 0 : i64, tpu.core_type = #tpu.core_type<tc>, window_params = [{transform_indices = @transform_0, window_bounds = array<i64: 16, 128>}, {pipeline_mode = #tpu.pipeline_mode<synchronous>, transform_indices = @transform_1, window_bounds = array<i64: 128, 512>}, {pipeline_mode = #tpu.pipeline_mode<synchronous>, transform_indices = @transform_2, window_bounds = array<i64: 1, 512>}, {pipeline_mode = #tpu.pipeline_mode<synchronous>, transform_indices = @transform_3, window_bounds = array<i64: 512, 256>}, {pipeline_mode = #tpu.pipeline_mode<synchronous>, transform_indices = @transform_4, window_bounds = array<i64: 1, 256>}, {pipeline_mode = #tpu.pipeline_mode<synchronous>, transform_indices = @transform_5, window_bounds = array<i64: 256, 8>}, {pipeline_mode = #tpu.pipeline_mode<synchronous>, transform_indices = @transform_6, window_bounds = array<i64: 1, 8>}, {transform_indices = @transform_7, window_bounds = array<i64: 16, 8>}]} {
    %c0 = arith.constant 0 : index
    %c0_0 = arith.constant 0 : index
    %0 = vector.load %arg1[%c0, %c0_0] : memref<16x128xbf16, #tpu.memory_space<vmem>>, vector<16x128xbf16>
    %c0_1 = arith.constant 0 : index
    %c0_2 = arith.constant 0 : index
    %1 = vector.load %arg2[%c0_1, %c0_2] : memref<128x512xbf16, #tpu.memory_space<vmem>>, vector<128x512xbf16>
    %cst = arith.constant dense<0.000000e+00> : vector<16x512xf32>
    %2 = tpu.matmul %0, %1, %cst {dimension_numbers = #tpu.dot_dimension_numbers<[1], [0], [0], [1], [0, 0, 1, 1], [], []>} : vector<16x128xbf16>, vector<128x512xbf16>, vector<16x512xf32> -> vector<16x512xf32>
    %c0_3 = arith.constant 0 : index
    %c0_4 = arith.constant 0 : index
    %3 = vector.load %arg3[%c0_3, %c0_4] : memref<1x512xf32, #tpu.memory_space<vmem>>, vector<1x512xf32>
    %4 = vector.broadcast %3 : vector<1x512xf32> to vector<16x512xf32>
    %5 = arith.addf %2, %4 : vector<16x512xf32>
    %cst_5 = arith.constant 0.000000e+00 : f32
    %6 = vector.broadcast %cst_5 : f32 to vector<16x512xf32>
    %7 = arith.maximumf %5, %6 : vector<16x512xf32>
    %8 = arith.truncf %7 : vector<16x512xf32> to vector<16x512xbf16>
    %c0_6 = arith.constant 0 : index
    %c0_7 = arith.constant 0 : index
    %9 = vector.load %arg4[%c0_6, %c0_7] : memref<512x256xbf16, #tpu.memory_space<vmem>>, vector<512x256xbf16>
    %cst_8 = arith.constant dense<0.000000e+00> : vector<16x256xf32>
    %10 = tpu.matmul %8, %9, %cst_8 {dimension_numbers = #tpu.dot_dimension_numbers<[1], [0], [0], [1], [0, 0, 1, 1], [], []>} : vector<16x512xbf16>, vector<512x256xbf16>, vector<16x256xf32> -> vector<16x256xf32>
    %c0_9 = arith.constant 0 : index
    %c0_10 = arith.constant 0 : index
    %11 = vector.load %arg5[%c0_9, %c0_10] : memref<1x256xf32, #tpu.memory_space<vmem>>, vector<1x256xf32>
    %12 = vector.broadcast %11 : vector<1x256xf32> to vector<16x256xf32>
    %13 = arith.addf %10, %12 : vector<16x256xf32>
    %cst_11 = arith.constant 0.000000e+00 : f32
    %14 = vector.broadcast %cst_11 : f32 to vector<16x256xf32>
    %15 = arith.maximumf %13, %14 : vector<16x256xf32>
    %16 = arith.truncf %15 : vector<16x256xf32> to vector<16x256xbf16>
    %c0_12 = arith.constant 0 : index
    %c0_13 = arith.constant 0 : index
    %17 = vector.load %arg6[%c0_12, %c0_13] : memref<256x8xbf16, #tpu.memory_space<vmem>>, vector<256x8xbf16>
    %cst_14 = arith.constant dense<0.000000e+00> : vector<16x8xf32>
    %18 = tpu.matmul %16, %17, %cst_14 {dimension_numbers = #tpu.dot_dimension_numbers<[1], [0], [0], [1], [0, 0, 1, 1], [], []>} : vector<16x256xbf16>, vector<256x8xbf16>, vector<16x8xf32> -> vector<16x8xf32>
    %c0_15 = arith.constant 0 : index
    %c0_16 = arith.constant 0 : index
    %19 = vector.load %arg7[%c0_15, %c0_16] : memref<1x8xf32, #tpu.memory_space<vmem>>, vector<1x8xf32>
    %20 = vector.broadcast %19 : vector<1x8xf32> to vector<16x8xf32>
    %21 = arith.addf %18, %20 : vector<16x8xf32>
    %22 = arith.mulf %21, %21 : vector<16x8xf32>
    %cst_17 = arith.constant dense<0.000000e+00> : vector<16xf32>
    %23 = vector.multi_reduction <add>, %22, %cst_17 [1] : vector<16x8xf32> to vector<16xf32>
    %24 = vector.shape_cast %23 : vector<16xf32> to vector<16x1xf32>
    %cst_18 = arith.constant 1.000000e-24 : f32
    %25 = vector.broadcast %cst_18 : f32 to vector<16x1xf32>
    %26 = arith.maximumf %24, %25 : vector<16x1xf32>
    %27 = math.rsqrt %26 : vector<16x1xf32>
    %28 = vector.broadcast %27 : vector<16x1xf32> to vector<16x8xf32>
    %29 = arith.mulf %21, %28 : vector<16x8xf32>
    %30 = arith.truncf %29 : vector<16x8xf32> to vector<16x8xbf16>
    %c0_19 = arith.constant 0 : index
    %c0_20 = arith.constant 0 : index
    %31 = vector.load %arg8[%c0_19, %c0_20] : memref<16x8xbf16, #tpu.memory_space<vmem>>, vector<16x8xbf16>
    tpu.vector_store %arg8[%c0_19, %c0_20], %30 {strides = array<i32>} : memref<16x8xbf16, #tpu.memory_space<vmem>>, vector<16x8xbf16>,
    return
  }
  func.func @transform_0(%arg0: i32) -> (i32, i32) {
    %c0_i32 = arith.constant 0 : i32
    %c0_i32_0 = arith.constant 0 : i32
    return %arg0, %c0_i32 : i32, i32
  }
  func.func @transform_1(%arg0: i32) -> (i32, i32) {
    %c0_i32 = arith.constant 0 : i32
    %c0_i32_0 = arith.constant 0 : i32
    %c0_i32_1 = arith.constant 0 : i32
    return %c0_i32, %c0_i32_0 : i32, i32
  }
  func.func @transform_2(%arg0: i32) -> (i32, i32) {
    %c0_i32 = arith.constant 0 : i32
    %c0_i32_0 = arith.constant 0 : i32
    %c0_i32_1 = arith.constant 0 : i32
    return %c0_i32, %c0_i32_0 : i32, i32
  }
  func.func @transform_3(%arg0: i32) -> (i32, i32) {
    %c0_i32 = arith.constant 0 : i32
    %c0_i32_0 = arith.constant 0 : i32
    %c0_i32_1 = arith.constant 0 : i32
    return %c0_i32, %c0_i32_0 : i32, i32
  }
  func.func @transform_4(%arg0: i32) -> (i32, i32) {
    %c0_i32 = arith.constant 0 : i32
    %c0_i32_0 = arith.constant 0 : i32
    %c0_i32_1 = arith.constant 0 : i32
    return %c0_i32, %c0_i32_0 : i32, i32
  }
  func.func @transform_5(%arg0: i32) -> (i32, i32) {
    %c0_i32 = arith.constant 0 : i32
    %c0_i32_0 = arith.constant 0 : i32
    %c0_i32_1 = arith.constant 0 : i32
    return %c0_i32, %c0_i32_0 : i32, i32
  }
  func.func @transform_6(%arg0: i32) -> (i32, i32) {
    %c0_i32 = arith.constant 0 : i32
    %c0_i32_0 = arith.constant 0 : i32
    %c0_i32_1 = arith.constant 0 : i32
    return %c0_i32, %c0_i32_0 : i32, i32
  }
  func.func @transform_7(%arg0: i32) -> (i32, i32) {
    %c0_i32 = arith.constant 0 : i32
    %c0_i32_0 = arith.constant 0 : i32
    return %arg0, %c0_i32 : i32, i32
  }
}

</mosaic_0001>

<bundles_post_ra>
// kernel: tpu_custom_call.1
= control target key start
LH: loop header
LB: loop body
LE: loop exit
PB: predicated region body
PF: predicated region fallthrough
CT: control target
= control target key end

     0   :  { %12 = vsyncpa [#allocation3], 0  ;;  %s1594_s0 = inlined_call_operand.vmem [shape: bf16[16,128], index: 0, kind: input, shape index: {}]   ;;  %s1595_s1 = inlined_call_operand.hbm [shape: bf16[128,512], index: 1, kind: input, shape index: {}]   ;;  %s1596_s2 = inlined_call_operand.vmem [shape: f32[1,512], index: 2, kind: input, shape index: {}]   ;;  %s1597_s3 = inlined_call_operand.hbm [shape: bf16[512,256], index: 3, kind: input, shape index: {}]   ;;  %s1598_s4 = inlined_call_operand.vmem [shape: f32[1,256], index: 4, kind: input, shape index: {}]   ;;  %s1599_s5 = inlined_call_operand.vmem [shape: bf16[256,8], index: 5, kind: input, shape index: {}]   ;;  %s1600_s6 = inlined_call_operand.vmem [shape: f32[1,8], index: 6, kind: input, shape index: {}]   ;;  %s1601_s7 = inlined_call_operand.vmem [shape: bf16[16,8], index: 7, kind: output, shape index: {}]  }
   0x1   :  { %13 = vsyncpa [#allocation5], 0  ;;  %s1439_s24 = smov [#allocation2]   ;;  %s1391_s28 = scalar_lea.hbm %s1595_s1, 4096 }
   0x2   :  { %s21_s25 = sshll.u32 %s1439_s24, 4  ;;  %p1392_p0 = scmp.ne.s32.totalorder %s1595_s1, %s1391_s28  ;;  %s22_s25 = int_to_ptr.vmem [resolvable:$true] %s21_s25 }
   0x3   :  { %p1395_p1 = scmp.lt.u32.totalorder %s1391_s28, %s1595_s1 }
   0x5   :  { %p1397_p2 = pnand %p1395_p1, %p1392_p0 }
   0x7   :  { %1400 = shalt.err (!%p1397_p2)
}
   0x8   :  { %s1401_s10 = scalar_lea.vmem %s22_s25, 4096  ;;  %p1406_p4 = scmp.lt.s32.totalorder %s22_s25, %s22_s25 }
   0x9   :  { %p1402_p3 = scmp.ne.s32.totalorder %s22_s25, %s1401_s10  ;;  %p1407_p5 = scmp.lt.s32.totalorder %s1401_s10, %s1401_s10 }
   0xb   :  { %p1408_p6 = por %p1407_p5, %p1406_p4 }
   0xd   :  { %p1409_p7 = pnand %p1408_p6, %p1402_p3 }
   0xf   :  { %1412 = shalt.err (!%p1409_p7)
}
  0x10   :  { %s1440_s11 = smov 256   ;;  %s1441_s12 = smov 16  }
  0x11   :  { %27 = dma.hbm_to_vmem [thread:$0]  %s1595_s1, 4096, %s22_s25, [#allocation3], %s1440_s11, %s1440_s11, %s1441_s12  }
  0x12   :  { %s1442_s15 = smov [#allocation4]   ;;  %s1413_s19 = scalar_lea.hbm %s1597_s3, 8192 }
  0x13   :  { %s35_s16 = sshll.u32 %s1442_s15, 4  ;;  %p1414_p8 = scmp.ne.s32.totalorder %s1597_s3, %s1413_s19  ;;  %s36_s16 = int_to_ptr.vmem [resolvable:$true] %s35_s16 }
  0x14   :  { %p1417_p9 = scmp.lt.u32.totalorder %s1413_s19, %s1597_s3 }
  0x16   :  { %p1419_p10 = pnand %p1417_p9, %p1414_p8 }
  0x18   :  { %1422 = shalt.err (!%p1419_p10)
}
  0x19   :  { %s1423_s24 = scalar_lea.vmem %s36_s16, 8192  ;;  %p1428_p12 = scmp.lt.s32.totalorder %s36_s16, %s36_s16 }
  0x1a   :  { %p1424_p11 = scmp.ne.s32.totalorder %s36_s16, %s1423_s24  ;;  %p1429_p13 = scmp.lt.s32.totalorder %s1423_s24, %s1423_s24 }
  0x1c   :  { %p1430_p0 = por %p1429_p13, %p1428_p12 }
  0x1e   :  { %p1431_p1 = pnand %p1430_p0, %p1424_p11 }
  0x20   :  { %1434 = shalt.err (!%p1431_p1)
}
  0x21   :  { %s1443_s1 = smov 128   ;;  %s1444_s25 = smov 8  }
  0x22   :  { %41 = dma.hbm_to_vmem [thread:$0]  %s1597_s3, 8192, %s36_s16, [#allocation5], %s1443_s1, %s1443_s1, %s1444_s25  }
  0x23   :  { %1435 = dma.done.wait [#allocation3], 4096  }
  0x24   :  { %1436 = vsyncadd [#allocation3], 4294963200 }
  0x25   :  { %1437 = dma.done.wait [#allocation5], 8192  }
  0x26   :  { %1438 = vsyncadd [#allocation5], 4294959104  ;;  %v1445_v0 = vmov 0   ;;  %v1226_v1 = vld [vmem:[#allocation2 + $0x4] ss:$16 sps:$4 sm:$0xff]   ;;  %vm1041_vm0 = vcmask 64512  }
  0x27   :  { %309 = vmatprep.mubr.bf16.mxu1 %v1445_v0  ;;  %v1228_v2 = vld [vmem:[#allocation2] ss:$16 sps:$4 sm:$0xff]   ;;  %277 = vmatprep.subr.bf16.mxu1 %v1226_v1  ;;  %v1229_v3 = vld [vmem:[#allocation2 + $0x24] ss:$16 sps:$4 sm:$0xff]   ;;  %v1253_v22 = vld [vmem:[#allocation2 + $0xc] ss:$16 sps:$4 sm:$0xff]  }
  0x28   :  { %278 = vmatpush1.bf16.msra.mxu1 %v1228_v2  ;;  %v1231_v4 = vld [vmem:[#allocation2 + $0x20] ss:$16 sps:$4 sm:$0xff]   ;;  %v1232_v5 = vld [vmem:[#allocation2 + $0x44] ss:$16 sps:$4 sm:$0xff]   ;;  %v1251_v25 = vld [vmem:[#allocation2 + $0x8] ss:$16 sps:$4 sm:$0xff]  }
  0x29   :  { %279 = vmatprep.subr.bf16.mxu1 %v1229_v3  ;;  %v1234_v6 = vld [vmem:[#allocation2 + $0x40] ss:$16 sps:$4 sm:$0xff]   ;;  %v1235_v7 = vld [vmem:[#allocation2 + $0x64] ss:$16 sps:$4 sm:$0xff]   ;;  %v1256_v26 = vld [vmem:[#allocation2 + $0x2c] ss:$16 sps:$4 sm:$0xff]  }
  0x2a   :  { %v1237_v8 = vld [vmem:[#allocation2 + $0x60] ss:$16 sps:$4 sm:$0xff]   ;;  %v1238_v9 = vld [vmem:[#allocation2 + $0x84] ss:$16 sps:$4 sm:$0xff]   ;;  %v1254_v29 = vld [vmem:[#allocation2 + $0x28] ss:$16 sps:$4 sm:$0xff]  }
  0x2b   :  { %v1240_v10 = vld [vmem:[#allocation2 + $0x80] ss:$16 sps:$4 sm:$0xff]   ;;  %v1241_v11 = vld [vmem:[#allocation2 + $0xa4] ss:$16 sps:$4 sm:$0xff]   ;;  %v1259_v31 = vld [vmem:[#allocation2 + $0x4c] ss:$16 sps:$4 sm:$0xff]  }
  0x2c   :  { %280 = vmatpush1.bf16.msra.mxu1 %v1231_v4  ;;  %v1243_v12 = vld [vmem:[#allocation2 + $0xa0] ss:$16 sps:$4 sm:$0xff]   ;;  %v1244_v13 = vld [vmem:[#allocation2 + $0xc4] ss:$16 sps:$4 sm:$0xff]   ;;  %v1257_v33 = vld [vmem:[#allocation2 + $0x48] ss:$16 sps:$4 sm:$0xff]  }
  0x2d   :  { %281 = vmatprep.subr.bf16.mxu1 %v1232_v5  ;;  %v1246_v14 = vld [vmem:[#allocation2 + $0xc0] ss:$16 sps:$4 sm:$0xff]   ;;  %v1275_v15 = vld [vmem:[#allocation4 + $0x4] ss:$8 sps:$4 sm:$0xff]   ;;  %v1278_v18 = vld [vmem:[#allocation4 + $0x14] ss:$8 sps:$4 sm:$0xff]  }
  0x2e   :  { %v1277_v16 = vld [vmem:[#allocation4] ss:$8 sps:$4 sm:$0xff]   ;;  %v1247_v17 = vld [vmem:[#allocation2 + $0xe4] ss:$16 sps:$4 sm:$0xff]   ;;  %771 = vmatprep.subr.bf16.mxu0 %v1275_v15  ;;  %v1280_v19 = vld [vmem:[#allocation4 + $0x10] ss:$8 sps:$4 sm:$0xff]  }
  0x2f   :  { %772 = vmatpush1.bf16.msra.mxu0 %v1277_v16  ;;  %v1249_v20 = vld [vmem:[#allocation2 + $0xe0] ss:$16 sps:$4 sm:$0xff]   ;;  %v1281_v21 = vld [vmem:[#allocation4 + $0x24] ss:$8 sps:$4 sm:$0xff]   ;;  %v1284_v27 = vld [vmem:[#allocation4 + $0x34] ss:$8 sps:$4 sm:$0xff]  }
  0x30   :  { %282 = vmatpush1.bf16.msra.mxu1 %v1234_v6  ;;  %773 = vmatprep.subr.bf16.mxu0 %v1278_v18  ;;  %v1513_v23 = vld [vmem:[%s1594_s0] sm:$0xff]   ;;  %v1286_v28 = vld [vmem:[#allocation4 + $0x30] ss:$8 sps:$4 sm:$0xff]   ;;  %v1290_v34 = vld [vmem:[#allocation4 + $0x54] ss:$8 sps:$4 sm:$0xff]   ;;  %vm1062_vm1 = vcmask 60416  }
  0x31   :  { %283 = vmatprep.subr.bf16.mxu1 %v1235_v7  ;;  %v1283_v24 = vld [vmem:[#allocation4 + $0x20] ss:$8 sps:$4 sm:$0xff]   ;;  %v1287_v30 = vld [vmem:[#allocation4 + $0x44] ss:$8 sps:$4 sm:$0xff]   ;;  %v1292_v36 = vld [vmem:[#allocation4 + $0x50] ss:$8 sps:$4 sm:$0xff]  }
  0x32   :  { %v1289_v32 = vld [vmem:[#allocation4 + $0x40] ss:$8 sps:$4 sm:$0xff]   ;;  %v1262_v35 = vld [vmem:[#allocation2 + $0x6c] ss:$16 sps:$4 sm:$0xff]   ;;  %v1298_v44 = vld [vmem:[#allocation4 + $0x70] ss:$8 sps:$4 sm:$0xff]  }
  0x33   :  { %774 = vmatpush1.bf16.msra.mxu0 %v1280_v19  ;;  %v1260_v37 = vld [vmem:[#allocation2 + $0x68] ss:$16 sps:$4 sm:$0xff]   ;;  %v1293_v38 = vld [vmem:[#allocation4 + $0x64] ss:$8 sps:$4 sm:$0xff]   ;;  %v1296_v42 = vld [vmem:[#allocation4 + $0x74] ss:$8 sps:$4 sm:$0xff]  }
  0x34   :  { %284 = vmatpush1.bf16.msra.mxu1 %v1237_v8  ;;  %775 = vmatprep.subr.bf16.mxu0 %v1281_v21  ;;  %v1265_v39 = vld [vmem:[#allocation2 + $0x8c] ss:$16 sps:$4 sm:$0xff]   ;;  %v1295_v40 = vld [vmem:[#allocation4 + $0x60] ss:$8 sps:$4 sm:$0xff]   ;;  %v1304_v52 = vld [vmem:[#allocation4 + $0x90] ss:$8 sps:$4 sm:$0xff]  }
  0x35   :  { %285 = vmatprep.subr.bf16.mxu1 %v1238_v9  ;;  %v1263_v41 = vld [vmem:[#allocation2 + $0x88] ss:$16 sps:$4 sm:$0xff]   ;;  %v1268_v43 = vld [vmem:[#allocation2 + $0xac] ss:$16 sps:$4 sm:$0xff]   ;;  %v1371_v3 = vld [vmem:[%s1599_s5 + $0x40] sm:$0xff]  }
  0x36   :  { %v1266_v45 = vld [vmem:[#allocation2 + $0xa8] ss:$16 sps:$4 sm:$0xff]   ;;  %v1299_v46 = vld [vmem:[#allocation4 + $0x84] ss:$8 sps:$4 sm:$0xff]   ;;  %v1302_v50 = vld [vmem:[#allocation4 + $0x94] ss:$8 sps:$4 sm:$0xff]  }
  0x37   :  { %776 = vmatpush1.bf16.msra.mxu0 %v1283_v24  ;;  %v1271_v47 = vld [vmem:[#allocation2 + $0xcc] ss:$16 sps:$4 sm:$0xff]   ;;  %v1301_v48 = vld [vmem:[#allocation4 + $0x80] ss:$8 sps:$4 sm:$0xff]   ;;  %v1310_v57 = vld [vmem:[#allocation4 + $0xb0] ss:$8 sps:$4 sm:$0xff]  }
  0x38   :  { %286 = vmatpush1.bf16.msra.mxu1 %v1240_v10  ;;  %777 = vmatprep.subr.bf16.mxu0 %v1284_v27  ;;  %v1269_v49 = vld [vmem:[#allocation2 + $0xc8] ss:$16 sps:$4 sm:$0xff]   ;;  %v1274_v51 = vld [vmem:[#allocation2 + $0xec] ss:$16 sps:$4 sm:$0xff]   ;;  %v1372_v4 = vld [vmem:[%s1599_s5] sm:$0xff]  }
  0x39   :  { %287 = vmatprep.subr.bf16.mxu1 %v1241_v11  ;;  %v1272_v53 = vld [vmem:[#allocation2 + $0xe8] ss:$16 sps:$4 sm:$0xff]   ;;  %v1305_v54 = vld [vmem:[#allocation4 + $0xa4] ss:$8 sps:$4 sm:$0xff]   ;;  %v1308_v56 = vld [vmem:[#allocation4 + $0xb4] ss:$8 sps:$4 sm:$0xff]  }
  0x3a   :  { %v1307_v55 = vld [vmem:[#allocation4 + $0xa0] ss:$8 sps:$4 sm:$0xff]   ;;  %v1311_v58 = vld [vmem:[#allocation4 + $0xc4] ss:$8 sps:$4 sm:$0xff]   ;;  %v1314_v60 = vld [vmem:[#allocation4 + $0xd4] ss:$8 sps:$4 sm:$0xff]  }
  0x3b   :  { %778 = vmatpush1.bf16.msra.mxu0 %v1286_v28  ;;  %v1313_v59 = vld [vmem:[#allocation4 + $0xc0] ss:$8 sps:$4 sm:$0xff]   ;;  %v1316_v61 = vld [vmem:[#allocation4 + $0xd0] ss:$8 sps:$4 sm:$0xff]   ;;  %v1317_v62 = vld [vmem:[#allocation4 + $0xe4] ss:$8 sps:$4 sm:$0xff]  }
  0x3c   :  { %288 = vmatpush1.bf16.msra.mxu1 %v1243_v12  ;;  %779 = vmatprep.subr.bf16.mxu0 %v1287_v30  ;;  %v1319_v63 = vld [vmem:[#allocation4 + $0xe0] ss:$8 sps:$4 sm:$0xff]   ;;  %v1322_v1 = vld [vmem:[#allocation4 + $0xf0] ss:$8 sps:$4 sm:$0xff]   ;;  %v1325_v2 = vld [vmem:[#allocation4 + $0x104] ss:$8 sps:$4 sm:$0xff]  }
  0x3d   :  { %289 = vmatprep.subr.bf16.mxu1 %v1244_v13  ;;  %v1373_v5 = vld [vmem:[%s1599_s5 + $0x48] sm:$0xff]   ;;  %v1375_v7 = vld [vmem:[%s1599_s5 + $0x50] sm:$0xff]   ;;  %v1377_v9 = vld [vmem:[%s1599_s5 + $0x58] sm:$0xff]  }
  0x3e   :  { %v1374_v6 = vld [vmem:[%s1599_s5 + $0x8] sm:$0xff]   ;;  %v1376_v8 = vld [vmem:[%s1599_s5 + $0x10] sm:$0xff]   ;;  %v1378_v10 = vld [vmem:[%s1599_s5 + $0x18] sm:$0xff]  }
  0x3f   :  { %780 = vmatpush1.bf16.msra.mxu0 %v1289_v32  ;;  %v1379_v11 = vld [vmem:[%s1599_s5 + $0x60] sm:$0xff]   ;;  %v1381_v13 = vld [vmem:[%s1599_s5 + $0x68] sm:$0xff]  }
  0x40   :  { %290 = vmatpush1.bf16.msra.mxu1 %v1246_v14  ;;  %781 = vmatprep.subr.bf16.mxu0 %v1290_v34  ;;  %v1380_v12 = vld [vmem:[%s1599_s5 + $0x20] sm:$0xff]   ;;  %v91_v14 = vlaneseq }
  0x41   :  { %291 = vmatprep.subr.bf16.mxu1 %v1247_v17  ;;  %v89_v17 = vld [vmem:[%s1596_s2] sm:$0xf] }
  0x42   :  { %v1550_v15 = vshrl.u32 %v91_v14, 7  ;;  %v1364_v14 = vld [vmem:[#allocation4 + $0x1d4] ss:$8 sps:$4 sm:$0xff]  }
  0x43   :  { %782 = vmatpush1.bf16.msra.mxu0 %v1292_v36  ;;  %v1328_v36 = vld [vmem:[#allocation4 + $0x114] ss:$8 sps:$4 sm:$0xff]  }
  0x44   :  { %292 = vmatpush1.bf16.msra.mxu1 %v1249_v20  ;;  %783 = vmatprep.subr.bf16.mxu0 %v1293_v38  ;;  %v93_v16 = vsub.s32 0, %v1550_v15  ;;  %v97_v18 = vsub.s32 1, %v1550_v15  ;;  %v1331_v38 = vld [vmem:[#allocation4 + $0x124] ss:$8 sps:$4 sm:$0xff]  }
  0x45   :  { %320 = vmatprep.subr.bf16.mxu1 %v1253_v22 }
  0x46   :  { %v94_v19 = vrot.slane %v89_v17, %v93_v16  ;;  %v98_v20 = vrot.slane %v89_v17, %v97_v18 }
  0x47   :  { %310 = vmatmul.mubr.bf16.vlgmr.msra.gmra.mrb[0].mxu1 %v1513_v23  ;;  %784 = vmatpush1.bf16.msra.mxu0 %v1295_v40  ;;  %v1334_v40 = vld [vmem:[#allocation4 + $0x134] ss:$8 sps:$4 sm:$0xff]  }
  0x48   :  { %321 = vmatpush1.bf16.msra.mxu1 %v1251_v25  ;;  %352 = vmatprep.mubr.bf16.mxu1 %v1445_v0  ;;  %v1320_v0 = vld [vmem:[#allocation4 + $0xf4] ss:$8 sps:$4 sm:$0xff]  }
  0x49   :  { %322 = vmatprep.subr.bf16.mxu1 %v1256_v26  ;;  %785 = vmatprep.subr.bf16.mxu0 %v1296_v42  ;;  %v1337_v42 = vld [vmem:[#allocation4 + $0x144] ss:$8 sps:$4 sm:$0xff]  }
  0x4b   :  { %786 = vmatpush1.bf16.msra.mxu0 %v1298_v44  ;;  %v1340_v44 = vld [vmem:[#allocation4 + $0x154] ss:$8 sps:$4 sm:$0xff]  }
  0x4c   :  { %323 = vmatpush1.bf16.msra.mxu1 %v1254_v29  ;;  %787 = vmatprep.subr.bf16.mxu0 %v1299_v46  ;;  %v105_v46 = vsub.s32 3, %v1550_v15 }
  0x4d   :  { %324 = vmatprep.subr.bf16.mxu1 %v1259_v31 }
  0x4f   :  { %788 = vmatpush1.bf16.msra.mxu0 %v1301_v48  ;;  %v1343_v48 = vld [vmem:[#allocation4 + $0x164] ss:$8 sps:$4 sm:$0xff]  }
  0x50   :  { %325 = vmatpush1.bf16.msra.mxu1 %v1257_v33  ;;  %789 = vmatprep.subr.bf16.mxu0 %v1302_v50  ;;  %v106_v50 = vrot.slane %v89_v17, %v105_v46 }
  0x51   :  { %326 = vmatprep.subr.bf16.mxu1 %v1262_v35  ;;  %v1323_v35 = vld [vmem:[#allocation4 + $0x100] ss:$8 sps:$4 sm:$0xff]  }
  0x53   :  { %790 = vmatpush1.bf16.msra.mxu0 %v1304_v52 }
  0x54   :  { %327 = vmatpush1.bf16.msra.mxu1 %v1260_v37  ;;  %791 = vmatprep.subr.bf16.mxu0 %v1305_v54  ;;  %v1326_v37 = vld [vmem:[#allocation4 + $0x110] ss:$8 sps:$4 sm:$0xff]  }
  0x55   :  { %328 = vmatprep.subr.bf16.mxu1 %v1265_v39  ;;  %v1329_v39 = vld [vmem:[#allocation4 + $0x120] ss:$8 sps:$4 sm:$0xff]  }
  0x57   :  { %792 = vmatpush1.bf16.msra.mxu0 %v1307_v55 }
  0x58   :  { %329 = vmatpush1.bf16.msra.mxu1 %v1263_v41  ;;  %793 = vmatprep.subr.bf16.mxu0 %v1308_v56  ;;  %v1332_v41 = vld [vmem:[#allocation4 + $0x130] ss:$8 sps:$4 sm:$0xff]  }
  0x59   :  { %330 = vmatprep.subr.bf16.mxu1 %v1268_v43  ;;  %v1335_v43 = vld [vmem:[#allocation4 + $0x140] ss:$8 sps:$4 sm:$0xff]  }
  0x5b   :  { %794 = vmatpush1.bf16.msra.mxu0 %v1310_v57 }
  0x5c   :  { %331 = vmatpush1.bf16.msra.mxu1 %v1266_v45  ;;  %795 = vmatprep.subr.bf16.mxu0 %v1311_v58  ;;  %v101_v45 = vsub.s32 2, %v1550_v15  ;;  %v1168_v15 = vld [vmem:[%s1600_s6] ss:$0 sm:$0xff] }
  0x5d   :  { %332 = vmatprep.subr.bf16.mxu1 %v1271_v47  ;;  %v1338_v47 = vld [vmem:[#allocation4 + $0x150] ss:$8 sps:$4 sm:$0xff]  }
  0x5f   :  { %796 = vmatpush1.bf16.msra.mxu0 %v1313_v59 }
  0x60   :  { %333 = vmatpush1.bf16.msra.mxu1 %v1269_v49  ;;  %797 = vmatprep.subr.bf16.mxu0 %v1314_v60  ;;  %v102_v49 = vrot.slane %v89_v17, %v101_v45  ;;  %v1362_v17 = vld [vmem:[#allocation4 + $0x1d0] ss:$8 sps:$4 sm:$0xff]  }
  0x61   :  { %334 = vmatprep.subr.bf16.mxu1 %v1274_v51  ;;  %v1341_v51 = vld [vmem:[#allocation4 + $0x160] ss:$8 sps:$4 sm:$0xff]  }
  0x63   :  { %798 = vmatpush1.bf16.msra.mxu0 %v1316_v61  ;;  %v1344_v61 = vld [vmem:[#allocation4 + $0x170] ss:$8 sps:$4 sm:$0xff]  }
  0x64   :  { %335 = vmatpush1.bf16.msra.mxu1 %v1272_v53  ;;  %799 = vmatprep.subr.bf16.mxu0 %v1317_v62  ;;  %v1346_v53 = vld [vmem:[#allocation4 + $0x174] ss:$8 sps:$4 sm:$0xff]  }
  0x65   :  { %1189 = vmatprep.subr.bf16.mxu1 %v1371_v3 }
  0x67   :  { %353 = vmatmul.mubr.bf16.vlgmr.msra.gmra.mrb[4].mxu1 %v1513_v23  ;;  %800 = vmatpush1.bf16.msra.mxu0 %v1319_v63 }
  0x68   :  { %801 = vmatprep.subr.bf16.mxu0 %v1320_v0  ;;  %1190 = vmatpush3.bf16.msra.mxu1 %v1372_v4  ;;  %v1349_v0 = vld [vmem:[#allocation4 + $0x184] ss:$8 sps:$4 sm:$0xff]   ;;  %v1347_v4 = vld [vmem:[#allocation4 + $0x180] ss:$8 sps:$4 sm:$0xff]  }
  0x69   :  { %1191 = vmatprep.subr.bf16.mxu1 %v1373_v5 }
  0x6b   :  { %802 = vmatpush1.bf16.msra.mxu0 %v1322_v1 }
  0x6c   :  { %814 = vmatprep.subr.bf16.mxu0 %v1325_v2  ;;  %1192 = vmatpush3.bf16.msra.mxu1 %v1374_v6  ;;  %v1352_v6 = vld [vmem:[#allocation4 + $0x194] ss:$8 sps:$4 sm:$0xff]  }
  0x6d   :  { %1193 = vmatprep.subr.bf16.mxu1 %v1375_v7  ;;  %v1350_v7 = vld [vmem:[#allocation4 + $0x190] ss:$8 sps:$4 sm:$0xff]  }
  0x70   :  { %1194 = vmatpush3.bf16.msra.mxu1 %v1376_v8  ;;  %v1355_v8 = vld [vmem:[#allocation4 + $0x1a4] ss:$8 sps:$4 sm:$0xff]  }
  0x71   :  { %1195 = vmatprep.subr.bf16.mxu1 %v1377_v9  ;;  %v1353_v9 = vld [vmem:[#allocation4 + $0x1a0] ss:$8 sps:$4 sm:$0xff]  }
  0x74   :  { %1196 = vmatpush3.bf16.msra.mxu1 %v1378_v10  ;;  %v1358_v10 = vld [vmem:[#allocation4 + $0x1b4] ss:$8 sps:$4 sm:$0xff]  }
  0x75   :  { %1197 = vmatprep.subr.bf16.mxu1 %v1379_v11  ;;  %v1356_v11 = vld [vmem:[#allocation4 + $0x1b0] ss:$8 sps:$4 sm:$0xff]  }
  0x78   :  { %1198 = vmatpush3.bf16.msra.mxu1 %v1380_v12  ;;  %v1361_v12 = vld [vmem:[#allocation4 + $0x1c4] ss:$8 sps:$4 sm:$0xff]  }
  0x79   :  { %1199 = vmatprep.subr.bf16.mxu1 %v1381_v13  ;;  %v1359_v13 = vld [vmem:[#allocation4 + $0x1c0] ss:$8 sps:$4 sm:$0xff]  }
 0x11a   :  { %v311_v21 = vpop.f32.mrb[0].mxu1 }
 0x11b   :  { %v312_v22 = vadd.f32 %v311_v21, %v94_v19  ;;  %v313_v23 = vpop.f32.mrb[1].mxu1  ;;  %v1370_v21 = vld [vmem:[#allocation4 + $0x1f4] ss:$8 sps:$4 sm:$0xff]  }
 0x11c   :  { %v314_v24 = vadd.f32 %v313_v23, %v98_v20  ;;  %v315_v25 = vpop.f32.mrb[2].mxu1  ;;  %v1382_v23 = vld [vmem:[%s1599_s5 + $0x28] sm:$0xff]  }
 0x11d   :  { %v316_v26 = vadd.f32 %v315_v25, %v94_v19  ;;  %v317_v27 = vpop.f32.mrb[3].mxu1  ;;  %v363_v29 = vmax.f32 %v312_v22, 0.0  ;;  %v1367_v19 = vld [vmem:[#allocation4 + $0x1e4] ss:$8 sps:$4 sm:$0xff]   ;;  %v1368_v22 = vld [vmem:[#allocation4 + $0x1f0] ss:$8 sps:$4 sm:$0xff]   ;;  %1200 = vmatpush3.bf16.msra.mxu1 %v1382_v23 }
 0x11e   :  { %v318_v28 = vadd.f32 %v317_v27, %v98_v20  ;;  %v364_v31 = vmax.f32 %v314_v24, 0.0  ;;  %v1365_v20 = vld [vmem:[#allocation4 + $0x1e0] ss:$8 sps:$4 sm:$0xff]   ;;  %v1383_v24 = vld [vmem:[%s1599_s5 + $0x70] sm:$0xff]   ;;  %v1386_v27 = vld [vmem:[%s1599_s5 + $0x38] sm:$0xff]  }
 0x11f   :  { %v367_v30 = vmax.f32 %v316_v26, 0.0  ;;  %v1384_v25 = vld [vmem:[%s1599_s5 + $0x30] sm:$0xff]   ;;  %1201 = vmatprep.subr.bf16.mxu1 %v1383_v24  ;;  %v1385_v26 = vld [vmem:[%s1599_s5 + $0x78] sm:$0xff]  }
 0x120   :  { %v368_v32 = vmax.f32 %v318_v28, 0.0  ;;  %v439_v28 = vld [vmem:[%s1598_s4] sm:$0x3] }
 0x121   :  { %v371_v33 = vpack.c.bf16 %v367_v30, %v363_v29  ;;  %1202 = vmatpush3.bf16.msra.mxu1 %v1384_v25  ;;  %v444_v29 = vrot.slane %v439_v28, %v93_v16  ;;  %v448_v30 = vrot.slane %v439_v28, %v97_v18 }
 0x122   :  { %v372_v34 = vpack.c.bf16 %v368_v32, %v364_v31  ;;  %1203 = vmatprep.subr.bf16.mxu1 %v1385_v26 }
 0x124   :  { %803 = vmatprep.mubr.bf16.mxu0 %v372_v34 }
 0x125   :  { %804 = vmatmul.mubr.bf16.vlgmr.msra.gmra.mrb[0].mxu0 %v371_v33  ;;  %1204 = vmatpush3.bf16.msra.mxu1 %v1386_v27 }
 0x126   :  { %815 = vmatpush1.bf16.msra.mxu0 %v1323_v35 }
 0x127   :  { %816 = vmatprep.subr.bf16.mxu0 %v1328_v36 }
 0x12a   :  { %817 = vmatpush1.bf16.msra.mxu0 %v1326_v37 }
 0x12b   :  { %818 = vmatprep.subr.bf16.mxu0 %v1331_v38 }
 0x12e   :  { %819 = vmatpush1.bf16.msra.mxu0 %v1329_v39 }
 0x12f   :  { %820 = vmatprep.subr.bf16.mxu0 %v1334_v40 }
 0x132   :  { %821 = vmatpush1.bf16.msra.mxu0 %v1332_v41 }
 0x133   :  { %822 = vmatprep.subr.bf16.mxu0 %v1337_v42 }
 0x136   :  { %823 = vmatpush1.bf16.msra.mxu0 %v1335_v43 }
 0x137   :  { %824 = vmatprep.subr.bf16.mxu0 %v1340_v44 }
 0x13a   :  { %825 = vmatpush1.bf16.msra.mxu0 %v1338_v47  ;;  %v354_v52 = vpop.f32.mrb[4].mxu1 }
 0x13b   :  { %826 = vmatprep.subr.bf16.mxu0 %v1343_v48  ;;  %v355_v54 = vadd.f32 %v354_v52, %v102_v49  ;;  %v356_v55 = vpop.f32.mrb[5].mxu1 }
 0x13c   :  { %v357_v56 = vadd.f32 %v356_v55, %v106_v50  ;;  %v358_v57 = vpop.f32.mrb[6].mxu1 }
 0x13d   :  { %v365_v58 = vmax.f32 %v355_v54, 0.0  ;;  %v359_v59 = vadd.f32 %v358_v57, %v102_v49  ;;  %v360_v60 = vpop.f32.mrb[7].mxu1 }
 0x13e   :  { %827 = vmatpush1.bf16.msra.mxu0 %v1341_v51  ;;  %v366_v62 = vmax.f32 %v357_v56, 0.0  ;;  %v361_v63 = vadd.f32 %v360_v60, %v106_v50 }
 0x13f   :  { %828 = vmatprep.subr.bf16.mxu0 %v1346_v53  ;;  %v369_v1 = vmax.f32 %v359_v59, 0.0 }
 0x140   :  { %v370_v2 = vmax.f32 %v361_v63, 0.0 }
 0x141   :  { %v373_v3 = vpack.c.bf16 %v369_v1, %v365_v58 }
 0x142   :  { %829 = vmatpush1.bf16.msra.mxu0 %v1344_v61  ;;  %v374_v5 = vpack.c.bf16 %v370_v2, %v366_v62 }
 0x143   :  { %830 = vmatprep.subr.bf16.mxu0 %v1349_v0 }
 0x144   :  { %846 = vmatprep.mubr.bf16.mxu0 %v374_v5 }
 0x146   :  { %831 = vmatpush1.bf16.msra.mxu0 %v1347_v4 }
 0x147   :  { %832 = vmatprep.subr.bf16.mxu0 %v1352_v6 }
 0x14a   :  { %833 = vmatpush1.bf16.msra.mxu0 %v1350_v7 }
 0x14b   :  { %834 = vmatprep.subr.bf16.mxu0 %v1355_v8 }
 0x14e   :  { %835 = vmatpush1.bf16.msra.mxu0 %v1353_v9 }
 0x14f   :  { %836 = vmatprep.subr.bf16.mxu0 %v1358_v10 }
 0x152   :  { %837 = vmatpush1.bf16.msra.mxu0 %v1356_v11 }
 0x153   :  { %838 = vmatprep.subr.bf16.mxu0 %v1361_v12 }
 0x156   :  { %839 = vmatpush1.bf16.msra.mxu0 %v1359_v13 }
 0x157   :  { %840 = vmatprep.subr.bf16.mxu0 %v1364_v14 }
 0x15a   :  { %841 = vmatpush1.bf16.msra.mxu0 %v1362_v17 }
 0x15b   :  { %842 = vmatprep.subr.bf16.mxu0 %v1367_v19 }
 0x15e   :  { %843 = vmatpush1.bf16.msra.mxu0 %v1365_v20 }
 0x15f   :  { %844 = vmatprep.subr.bf16.mxu0 %v1370_v21 }
 0x162   :  { %845 = vmatpush1.bf16.msra.mxu0 %v1368_v22 }
 0x165   :  { %847 = vmatmul.mubr.bf16.vlgmr.msra.gmra.mrb[0].mxu0 %v373_v3 }
 0x238   :  { %v848_v31 = vpop.f32.mrb[0].mxu0 }
 0x239   :  { %v1211_v32 = vadd.f32 %v848_v31, %v444_v29  ;;  %v850_v33 = vpop.f32.mrb[1].mxu0 }
 0x23a   :  { %v1212_v34 = vadd.f32 %v850_v33, %v448_v30  ;;  %v852_v35 = vpop.f32.mrb[2].mxu0 }
 0x23b   :  { %v1213_v36 = vadd.f32 %v852_v35, %v444_v29  ;;  %v854_v37 = vpop.f32.mrb[3].mxu0  ;;  %v857_v39 = vmax.f32 %v1211_v32, 0.0 }
 0x23c   :  { %v1214_v38 = vadd.f32 %v854_v37, %v448_v30  ;;  %v858_v41 = vmax.f32 %v1212_v34, 0.0 }
 0x23d   :  { %v859_v40 = vmax.f32 %v1213_v36, 0.0 }
 0x23e   :  { %v860_v42 = vmax.f32 %v1214_v38, 0.0 }
 0x23f   :  { %v861_v43 = vpack.c.bf16 %v859_v40, %v857_v39 }
 0x240   :  { %v862_v44 = vpack.c.bf16 %v860_v42, %v858_v41 }
 0x242   :  { %1030 = vmatprep.mubr.bf16.mxu1 %v862_v44 }
 0x243   :  { %1031 = vmatmul.mubr.bf16.vlgmr.msra.gmra.mrb[8].mxu1 %v861_v43 }
 0x316   :  { %v1205_v16 = vpop.f32.mrb[8].mxu1 }
 0x317   :  { %v1206_v18 = vpop.f32.mrb[9].mxu1 }
 0x318   :  { %v1207_v45 = vadd.f32 %v1206_v18, %v1205_v16  ;;  %v1208_v46 = vpop.f32.mrb[10].mxu1 }
 0x319   :  { %v1209_v47 = vpop.f32.mrb[11].mxu1 }
 0x31a   :  { %v1033_v48 = vadd.f32 %v1207_v45, %v1168_v15  ;;  %v1210_v49 = vadd.f32 %v1209_v47, %v1208_v46 }
 0x31c   :  { %v1036_v50 = vadd.f32 %v1210_v49, %v1168_v15  ;;  %v1039_v51 = vmul.f32 %v1033_v48, %v1033_v48 }
 0x31e   :  { %v1042_v52 = vsel %vm1041_vm0, %v1039_v51, 0.0  ;;  %v1040_v53 = vmul.f32 %v1036_v50, %v1036_v50 }
 0x31f   :  { %1043 = vadd.xlane.f32.xlu0 %v1042_v52 }
 0x320   :  { %v1045_v54 = vsel %vm1041_vm0, %v1040_v53, 0.0 }
 0x323   :  { %1046 = vadd.xlane.f32.xlu0 %v1045_v54 }
 0x3ac   :  { %v1044_v55 = vpop.xlane.xlu0 %1043 }
 0x3ad   :  { %v1048_v56 = vmax.f32 %v1044_v55, 1e-24 }
 0x3af   :  { %1387 = vrsqrt.f32 %v1048_v56 }
 0x3b0   :  { %v1047_v57 = vpop.xlane.xlu0 %1046 }
 0x3b1   :  { %v1049_v58 = vmax.f32 %v1047_v57, 1e-24 }
 0x3b3   :  { %1389 = vrsqrt.f32 %v1049_v58 }
 0x3b9   :  { %v1388_v59 = vpop.eup %1387 }
 0x3ba   :  { %v1052_v60 = vmul.f32 %v1388_v59, %v1033_v48 }
 0x3bc   :  { %v1187_v61 = vpack.c.bf16 %v1052_v60, %v1052_v60 }
 0x3bd   :  { %v1390_v62 = vpop.eup %1389 }
 0x3be   :  { %1063 = vst.msk [vmem:[%s1601_s7] sm:$0xf] %vm1062_vm1, %v1187_v61  ;;  %v1053_v63 = vmul.f32 %v1390_v62, %v1036_v50 }
 0x3c0   :  { %v1188_v0 = vpack.c.bf16 %v1053_v63, %v1053_v63 }
 0x3c2   :  { %1064 = vst.msk [vmem:[%s1601_s7 + $0x4] sm:$0xf] %vm1062_vm1, %v1188_v0 }
 0x3c3   :  { %1069 = vsyncpa [#allocation3], 1 }
 0x3c4   :  { %1070 = vsyncpa [#allocation5], 1 }

</bundles_post_ra>
